<compile_context>
chip_gen: v5e
topology: v5e:2x2
jax: 0.10.0
libtpu: 0.0.40
codegen_flags: <defaults>
</compile_context>

<pallas_src>
import jax
import jax.numpy as jnp
from jax.experimental import pallas as pl
from jax.experimental.pallas import tpu as pltpu


# ----------------------------------------------------------------------------- kernel

def _conv1x1_kernel(x_ref, w_ref, b_ref, o_ref):
    # x_ref: (Nb, C_in, T)   activation tile(s): channels on sublanes, spatial on lanes
    # w_ref: (C_out, C_in)   full weight, resident across grid steps
    # b_ref: (C_out, 1)      bias (float32), resident
    # o_ref: (Nb, C_out, T)  lane-dense output tile(s)
    w = w_ref[...]
    b = b_ref[...]
    for i in range(x_ref.shape[0]):  # Nb is a small static constant
        acc = jnp.dot(w, x_ref[i], preferred_element_type=jnp.float32)
        o_ref[i] = (acc + b).astype(o_ref.dtype)


# ----------------------------------------------------------------------------- tiling

_VMEM_BLOCK_BUDGET = 24 * 1024 * 1024   # bytes for the double-buffered input block
_VMEM_LIMIT_BYTES = 40 * 1024 * 1024    # scoped VMEM limit (safe on v5e/v6e/v7x)


def _pick_tiles(N, C, HW, itemsize, *, vmem_block_budget=_VMEM_BLOCK_BUDGET,
                prefer_min_steps=2):
    """Choose (Nb, T): images per grid step and the spatial (lane) tile.

    * T is either the full spatial extent HW or a multiple of 128, sized so the
      double-buffered input block 2*Nb*C*T*itemsize fits `vmem_block_budget`.
    * Among multiple-of-128 candidates, prefer one that evenly divides HW so
      there is no padded tail tile (all stores unmasked / lane-dense).
    * Small levels (whole image fits in one tile): batch Nb images per step to
      amortize the ~0.35us fixed per-step cost, but keep >= prefer_min_steps
      total grid steps so both v7x TensorCores get work.
    * Single-image, single-tile case: split spatially to reach >= 2 steps.
    """
    per_lane = 2 * C * itemsize                       # dbl-buffered input bytes / lane
    t_cap = max(128, (vmem_block_budget // per_lane) // 128 * 128)

    if HW <= t_cap:
        t = HW                                        # whole spatial extent in one tile
    else:
        t = None
        cand = t_cap
        while cand >= 128:                            # prefer an exactly-dividing tile
            if HW % cand == 0:
                t = cand
                break
            cand -= 128
        if t is None:
            t = t_cap                                 # fall back: masked tail tile

    # Batch images per step only when the whole spatial extent fits in one tile.
    nb = 1
    if t == HW:
        per_image = per_lane * HW
        nb = max(1, min(N, vmem_block_budget // max(1, per_image)))
        if N >= prefer_min_steps:
            nb = min(nb, -(-N // prefer_min_steps))   # keep >= 2 steps for megacore

    # Single-image, single-tile: split spatially so v7x gets >= 2 parallel steps.
    n_steps = (-(-N // nb)) * (-(-HW // t))
    if n_steps < prefer_min_steps and nb == 1 and t == HW and HW >= 256:
        half = (HW // 2) // 128 * 128
        if half >= 128:
            t2 = None
            cand = half
            while cand >= 128:                        # prefer an exactly-dividing split
                if HW % cand == 0 and HW // cand >= prefer_min_steps:
                    t2 = cand
                    break
                cand -= 128
            t = t2 if t2 is not None else half

    return nb, t


# ----------------------------------------------------------------------------- wrapper

def conv1x1_nchw(x3, w_oc, b):
    """1x1 convolution on a channels-major activation layout.

    x3:   (N, C_in, H*W)   activations (f32 or bf16), no transpose needed
    w_oc: (C_out, C_in)    weight (same dtype as x3)
    b:    (C_out, 1)       bias, float32
    returns (N, C_out, H*W) in x3.dtype
    """
    N, C, HW = x3.shape
    Cout = w_oc.shape[0]
    itemsize = jnp.dtype(x3.dtype).itemsize

    nb, t = _pick_tiles(N, C, HW, itemsize)
    grid = (pl.cdiv(N, nb), pl.cdiv(HW, t))

    cost = pl.CostEstimate(
        flops=2 * N * Cout * C * HW,
        transcendentals=0,
        bytes_accessed=(N * C * HW * itemsize            # activations (read once)
                        + Cout * C * itemsize + Cout * 4  # weight + bias
                        + N * Cout * HW * itemsize),      # output
    )

    return pl.pallas_call(
        _conv1x1_kernel,
        out_shape=jax.ShapeDtypeStruct((N, Cout, HW), x3.dtype),
        grid_spec=pltpu.PrefetchScalarGridSpec(
            num_scalar_prefetch=0,
            grid=grid,
            in_specs=[
                pl.BlockSpec((nb, C, t), lambda n, j: (n, 0, j)),   # activation tile(s)
                pl.BlockSpec((Cout, C), lambda n, j: (0, 0)),       # weight (resident)
                pl.BlockSpec((Cout, 1), lambda n, j: (0, 0)),       # bias (resident)
            ],
            out_specs=pl.BlockSpec((nb, Cout, t), lambda n, j: (n, 0, j)),
        ),
        compiler_params=pltpu.CompilerParams(
            dimension_semantics=("parallel", "parallel"),
            vmem_limit_bytes=_VMEM_LIMIT_BYTES,
        ),
        cost_estimate=cost,
    )(x3, w_oc, b)


class ClassHeadPallas:
    """JAX/Pallas port of the RetinaFace ClassHead."""

    def __init__(self, inchannels=512, num_anchors=2, key=None):
        self.inchannels = inchannels
        self.num_anchors = num_anchors
        out_ch = num_anchors * 2
        if key is None:
            key = jax.random.PRNGKey(0)
        kw, kb = jax.random.split(key)
        # Deterministic synthetic params (PyTorch conv weight shape: (O, C, 1, 1)).
        self.w_oc = jax.random.normal(kw, (out_ch, inchannels), jnp.float32) * 0.02
        self.b = jax.random.normal(kb, (out_ch, 1), jnp.float32) * 0.01

    def __call__(self, x_nchw):
        N, C, H, W = x_nchw.shape
        assert C == self.inchannels
        # Free reshape — activation stays in its native NCHW layout (no transpose).
        x3 = x_nchw.reshape(N, C, H * W)
        # bf16 weights if activations are bf16 (deliberate precision trade-off;
        # the kernel still accumulates in f32 and adds the f32 bias).
        w = self.w_oc.astype(x_nchw.dtype)
        out3 = conv1x1_nchw(x3, w, self.b)                         # (N, out_ch, H*W)
        # Tiny fixup on the 4-channel output only:
        # (N, out_ch, HW) -> (N, HW, out_ch) -> (N, HW*num_anchors, 2),
        # matching PyTorch's permute(0, 2, 3, 1).view(N, -1, 2).
        # Kept out of the kernel on purpose: moving it in would make the stores
        # lane-width-4 (the documented worst case for TPU stores).
        return jnp.transpose(out3, (0, 2, 1)).reshape(
            N, H * W * self.num_anchors, 2)


# ----------------------------------------------------------------------------- test

def _reference(head, x, N, H, W):
    # Plain-JAX reference with the same math, in f32 (f32 weights).
    xf = x.astype(jnp.float32)
    out = jnp.einsum("nchw,oc->nohw", xf, head.w_oc) + head.b.reshape(1, -1, 1, 1)
    out = jnp.transpose(out, (0, 2, 3, 1))                          # NCHW -> NHWC
    return out.reshape(N, H * W * head.num_anchors, 2)


if __name__ == "__main__":
    key = jax.random.PRNGKey(0)
    kx1, kx2, kp1, kp2 = jax.random.split(key, 4)

    # --- Case 1: module defaults (C=512), batch of 2, 16x16 feature map -----
    N, C, H, W = 2, 512, 16, 16
    head = ClassHeadPallas(inchannels=C, num_anchors=2, key=kp1)

    x_f32 = jax.random.normal(kx1, (N, C, H, W), jnp.float32)
    out_f32 = jax.block_until_ready(head(x_f32))
    assert out_f32.shape == (N, H * W * 2, 2)
    assert jnp.allclose(out_f32, _reference(head, x_f32, N, H, W),
                        atol=1e-4, rtol=1e-4)

    # bf16 path (bandwidth-optimized; f32 accumulation inside the kernel).
    x_bf16 = x_f32.astype(jnp.bfloat16)
    out_bf16 = jax.block_until_ready(head(x_bf16))
    assert out_bf16.shape == (N, H * W * 2, 2)
    assert out_bf16.dtype == jnp.bfloat16
    assert jnp.allclose(out_bf16.astype(jnp.float32),
                        _reference(head, x_bf16, N, H, W),
                        atol=5e-2, rtol=5e-2)

    # --- Case 2: single image, non-128-divisible spatial extent -------------
    # Exercises the >=2-step megacore split and the masked tail-tile path.
    N2, C2, H2, W2 = 1, 256, 20, 20
    head2 = ClassHeadPallas(inchannels=C2, num_anchors=2, key=kp2)
    x2 = jax.random.normal(kx2, (N2, C2, H2, W2), jnp.float32)
    out2 = jax.block_until_ready(head2(x2))
    assert out2.shape == (N2, H2 * W2 * 2, 2)
    assert jnp.allclose(out2, _reference(head2, x2, N2, H2, W2),
                        atol=1e-4, rtol=1e-4)

    print("KERNEL_OK")
</pallas_src>

<mosaic_0001>
module attributes {stable_mosaic.version = 11 : i64} {
  func.func @_conv1x1_kernel(%arg0: i32, %arg1: i32, %arg2: memref<1x512x256xf32, #tpu.memory_space<vmem>>, %arg3: memref<4x512xf32, #tpu.memory_space<vmem>>, %arg4: memref<4x1xf32, #tpu.memory_space<vmem>>, %arg5: memref<1x4x256xf32, #tpu.memory_space<vmem>>) attributes {dimension_semantics = [#tpu.dimension_semantics<parallel>, #tpu.dimension_semantics<parallel>], iteration_bounds = array<i64: 2, 1>, scalar_prefetch = 0 : i64, scratch_operands = 0 : i64, tpu.core_type = #tpu.core_type<tc>, window_params = [{transform_indices = @transform_0, window_bounds = array<i64: 1, 512, 256>}, {pipeline_mode = #tpu.pipeline_mode<synchronous>, transform_indices = @transform_1, window_bounds = array<i64: 4, 512>}, {pipeline_mode = #tpu.pipeline_mode<synchronous>, transform_indices = @transform_2, window_bounds = array<i64: 4, 1>}, {transform_indices = @transform_3, window_bounds = array<i64: 1, 4, 256>}]} {
    %c0 = arith.constant 0 : index
    %c0_0 = arith.constant 0 : index
    %0 = vector.load %arg3[%c0, %c0_0] : memref<4x512xf32, #tpu.memory_space<vmem>>, vector<4x512xf32>
    %c0_1 = arith.constant 0 : index
    %c0_2 = arith.constant 0 : index
    %1 = vector.load %arg4[%c0_1, %c0_2] : memref<4x1xf32, #tpu.memory_space<vmem>>, vector<4x1xf32>
    %c0_3 = arith.constant 0 : index
    %c0_4 = arith.constant 0 : index
    %c0_5 = arith.constant 0 : index
    %2 = vector.load %arg2[%c0_3, %c0_4, %c0_5] : memref<1x512x256xf32, #tpu.memory_space<vmem>>, vector<1x512x256xf32>
    %3 = vector.shape_cast %2 : vector<1x512x256xf32> to vector<512x256xf32>
    %cst = arith.constant dense<0.000000e+00> : vector<4x256xf32>
    %4 = tpu.matmul %0, %3, %cst {dimension_numbers = #tpu.dot_dimension_numbers<[1], [0], [0], [1], [0, 0, 1, 1], [], []>} : vector<4x512xf32>, vector<512x256xf32>, vector<4x256xf32> -> vector<4x256xf32>
    %5 = vector.broadcast %1 : vector<4x1xf32> to vector<4x256xf32>
    %6 = arith.addf %4, %5 : vector<4x256xf32>
    %c0_6 = arith.constant 0 : index
    %c0_7 = arith.constant 0 : index
    %c0_8 = arith.constant 0 : index
    %7 = vector.load %arg5[%c0_6, %c0_7, %c0_8] : memref<1x4x256xf32, #tpu.memory_space<vmem>>, vector<1x4x256xf32>
    %8 = vector.shape_cast %7 : vector<1x4x256xf32> to vector<4x256xf32>
    %9 = vector.shape_cast %6 : vector<4x256xf32> to vector<1x4x256xf32>
    tpu.vector_store %arg5[%c0_6, %c0_7, %c0_8], %9 {strides = array<i32>} : memref<1x4x256xf32, #tpu.memory_space<vmem>>, vector<1x4x256xf32>,
    return
  }
  func.func @transform_0(%arg0: i32, %arg1: i32) -> (i32, i32, i32) {
    %c0_i32 = arith.constant 0 : i32
    %c0_i32_0 = arith.constant 0 : i32
    return %arg0, %c0_i32, %arg1 : i32, i32, i32
  }
  func.func @transform_1(%arg0: i32, %arg1: i32) -> (i32, i32) {
    %c0_i32 = arith.constant 0 : i32
    %c0_i32_0 = arith.constant 0 : i32
    %c0_i32_1 = arith.constant 0 : i32
    return %c0_i32, %c0_i32_0 : i32, i32
  }
  func.func @transform_2(%arg0: i32, %arg1: i32) -> (i32, i32) {
    %c0_i32 = arith.constant 0 : i32
    %c0_i32_0 = arith.constant 0 : i32
    %c0_i32_1 = arith.constant 0 : i32
    return %c0_i32, %c0_i32_0 : i32, i32
  }
  func.func @transform_3(%arg0: i32, %arg1: i32) -> (i32, i32, i32) {
    %c0_i32 = arith.constant 0 : i32
    %c0_i32_0 = arith.constant 0 : i32
    return %arg0, %c0_i32, %arg1 : i32, i32, i32
  }
}

</mosaic_0001>

<bundles_post_ra>
// kernel: tpu_custom_call.1
= control target key start
LH: loop header
LB: loop body
LE: loop exit
PB: predicated region body
PF: predicated region fallthrough
CT: control target
= control target key end

     0   :  { %s1208_s0 = inlined_call_operand.hbm [shape: f32[2,512,256], index: 0, kind: input, shape index: {}]   ;;  %s1209_s1 = inlined_call_operand.hbm [shape: f32[4,512], index: 1, kind: input, shape index: {}]   ;;  %s1210_s2 = inlined_call_operand.vmem [shape: f32[4,1], index: 2, kind: input, shape index: {}]   ;;  %s1211_s3 = inlined_call_operand.hbm [shape: f32[2,4,256], index: 3, kind: output, shape index: {}]  }
   0x1   :  { %1212 = sst [smem:[#allocation11_spill]] %s1209_s1 }
   0x2   :  { %8 = vsyncpa [#allocation3], 0 }
   0x3   :  { %10 = vsyncpa [#allocation3 + $0x1], 0 }
   0x4   :  { %11 = vsyncpa [#allocation6], 0 }
   0x5   :  { %12 = vsyncpa [#allocation4], 0 }
   0x6   :  { %14 = vsyncpa [#allocation4 + $0x1], 0  ;;  %s923_s12 = smov 0   ;;  %s925_s13 = smov 0  }
   0x7   :  { %s927_s14 = smov 0   ;;  %s929_s15 = smov 0  }
   0x8   :  { %s931_s16 = smov 0   ;;  %s933_s17 = smov 0  }
   0x9 LB: > { %s655_s18 = sadd.s32 4294967295, %s897_s17   ;;  %s656_s19 = sadd.s32 4294967294, %s897_s17   ;;  %s897_s17 = sphi %s933_s17, %s20_s17   ;;  %s893_s16 = sphi %s931_s16, %s1225_s16   ;;  %s889_s15 = sphi %s929_s15, %s1224_s15   ;;  %s885_s14 = sphi %s927_s14, %s1223_s14   ;;  %s881_s13 = sphi %s925_s13, %s1222_s13   ;;  %s877_s12 = sphi %s923_s12, %s1221_s12  }
   0xa   : > { %s41_s20 = sadd.s32 1, %s885_s14  ;;  %p48_p0 = scmp.ne.s32.totalorder %s885_s14, %s881_s13 }
   0xb   : > { %p49_p1 = scmp.eq.s32.totalorder %s897_s17, 0  ;;  %p54_p2 = scmp.ne.s32.totalorder %s881_s13, %s877_s12 }
   0xc   : > { %p961_p3 = scmp.eq.s32.totalorder %s655_s18, 0  ;;  %p122_p4 = scmp.eq.s32.totalorder %s655_s18, 1 }
   0xd   : > { %p965_p5 = por %p49_p1, %p48_p0  ;;  %p128_p6 = scmp.eq.s32.totalorder %s656_s19, 1 }
   0xe   : > { %p971_p7 = por %p961_p3, %p54_p2  ;;  %p975_p8 = por %p122_p4, %p48_p0 }
   0xf   : > { %p979_p9 = por %p128_p6, %p54_p2  ;;  %p657_p10 = scmp.ge.s32.totalorder %s897_s17, 1 }
  0x10   : > { %p135_p11 = scmp.lt.s32.totalorder %s897_s17, 3  ;;  %s1218_s1 = sld [smem:[#allocation11_spill]] }
  0x11   : > { %s899_s30 = smov [#allocation5]   ;;  %p659_p13 = scmp.ge.s32.totalorder %s897_s17, 2 }
  0x12   : > { %p988_p12 = pnand %p657_p10, %p135_p11  ;;  %s149_s4 = sshll.u32 %s899_s30, 4  ;;  %s150_s4 = int_to_ptr.vmem [resolvable:$true] %s149_s4 }
  0x13   : > { %p695_p1 = scmp.lt.s32.totalorder %s897_s17, 2  ;;  %s32_s6 = sadd.s32 1, %s893_s16 }
  0x14   : > { %p682_p0 = pneg %p988_p12  ;;  %p34_p6 = scmp.ge.s32.totalorder %s32_s6, 2 }
  0x15   : > { %p1000_p4 = pnand %p695_p1, %p965_p5  ;;  %s163_s7 = sand.u32 1, %s885_s14  }
  0x16   : > { %s147_s28 = sshll.u32 %s1218_s1, 4  ;;  %p683_p2 = pnand %p682_p0, %p961_p3  ;;  %s148_s28 = int_to_ptr.hbm [resolvable:$true] %s147_s28 }
  0x17   : > { %s1227_s6 = smov (%p34_p6, %s32_s6), 0  ;;  %s660_s8 = sshll.u32 %s163_s7, 10 }
  0x18   : > { %685 = dma.hbm_to_vmem [thread:$0]  (!%p683_p2), %s148_s28, 256, %s150_s4, [#allocation6]  }
  0x19   : > { %s36_s9 = ssub.s32 %s893_s16, %s1227_s6  ;;  %s672_s10 = sshll.u32 %s893_s16, 10 }
  0x1a   : > { %p39_p10 = scmp.eq.s32.totalorder %s36_s9, 0  ;;  %s174_s19 = scalar_lea.hbm %s1208_s0, %s672_s10 }
  0x1b   : > { %s167_s22 = scalar_lea.vmem [#allocation2], %s660_s8  ;;  %s175_s30 = sshll.u32 %s174_s19, 4  ;;  %s176_s30 = int_to_ptr.hbm [resolvable:$true] %s175_s30 }
  0x1c   : > { %s177_s26 = sshll.u32 %s167_s22, 4  ;;  %s164_s28 = scalar_lea.sflag [#allocation3], %s163_s7  ;;  %s178_s26 = int_to_ptr.vmem [resolvable:$true] %s177_s26 }
  0x1d   : > { %s1017_s27 = scalar_select %p39_p10, %s885_s14, %s41_s20  }
  0x1e   : > { %s900_s4 = smov 256   ;;  %s901_s1 = smov 16  }
  0x1f   : > { %689 = dma.hbm_to_vmem [thread:$0]  (!%p1000_p4), %s176_s30, 16384, %s178_s26, %s164_s28, %s900_s4, %s900_s4, %s901_s1  }
  0x20   : > { %189 = sbr.rel (%p988_p12) target bundleno = 248 (0xf8), region = 32  ;;  %s1024_s9 = sand.u32 (!%p988_p12), 1, %s881_s13  }
  0x21   : > { %s664_s8 = sshll.u32 (!%p988_p12), %s1024_s9, 10  ;;  %s192_s20 = scalar_lea.sflag (!%p988_p12), [#allocation3], %s1024_s9 }
  0x22   : > { %s1028_s10 = scalar_lea.vmem (!%p988_p12), [#allocation2], %s664_s8 }
  0x25   : > { %864 = dma.done.wait (%p971_p7), %s192_s20, 16384  }
  0x26   : > { %866 = vsyncadd (%p971_p7), %s192_s20, 4294950912 }
  0x27   : > { %868 = dma.done.wait (%p961_p3), [#allocation6], 256  }
  0x28   : > { %870 = vsyncadd (%p961_p3), [#allocation6], 4294967040  ;;  %v323_v0 = vld [vmem:[%s1028_s10 + $0x2f0] sm:$0xff]  ;;  %v321_v2 = vld [vmem:[%s1028_s10 + $0x2e0] sm:$0xff]  ;;  %s666_s23 = sshll.u32 %s1024_s9, 3  ;;  %s673_s29 = sshll.u32 %s889_s15, 3 }
  0x29   : > { %v259_v1 = vld [vmem:[%s1028_s10 + $0xf0] sm:$0xff]  ;;  %415 = vmatpush.msra.mxu2 %v323_v0  ;;  %v257_v4 = vld [vmem:[%s1028_s10 + $0xe0] sm:$0xff]  ;;  %v324_v62 = vld [vmem:[%s1028_s10 + $0x2f8] sm:$0xff]  ;;  %s556_s11 = scalar_lea.hbm %s1211_s3, %s673_s29  ;;  %s223_s18 = scalar_lea.vmem [#allocation7], %s666_s23  ;;  %vm538_vm0 = vcmask 1043456  }
  0x2a   : > { %375 = vmatpush.msra.mxu0 %v259_v1  ;;  %v355_v3 = vld [vmem:[%s1028_s10 + $0x3f0] sm:$0xff]  ;;  %v353_v7 = vld [vmem:[%s1028_s10 + $0x3e0] sm:$0xff]  ;;  %v260_v0 = vld [vmem:[%s1028_s10 + $0xf8] sm:$0xff]  ;;  %s558_s19 = sshll.u32 %s223_s18, 4  ;;  %s560_s22 = sshll.u32 %s556_s11, 4  ;;  %s559_s19 = int_to_ptr.vmem [resolvable:$true] %s558_s19  ;;  %s561_s22 = int_to_ptr.hbm [resolvable:$true] %s560_s22 }
  0x2b   : > { %v291_v5 = vld [vmem:[%s1028_s10 + $0x1f0] sm:$0xff]  ;;  %435 = vmatpush.msra.mxu3 %v355_v3  ;;  %416 = vmatpush.msra.mxu2 %v321_v2  ;;  %v289_v9 = vld [vmem:[%s1028_s10 + $0x1e0] sm:$0xff]  ;;  %v356_v1 = vld [vmem:[%s1028_s10 + $0x3f8] sm:$0xff]  ;;  %s543_s15 = scalar_lea.sflag [#allocation4], %s1024_s9  ;;  %s825_s26 = sshra.s32 %s561_s22, 4  ;;  %s826_s26 = int_to_ptr.hbm [resolvable:$true] %s825_s26 }
  0x2c   : > { %395 = vmatpush.msra.mxu1 %v291_v5  ;;  %v319_v6 = vld [vmem:[%s1028_s10 + $0x2d0] sm:$0xff]  ;;  %376 = vmatpush.msra.mxu0 %v257_v4  ;;  %v317_v11 = vld [vmem:[%s1028_s10 + $0x2c0] sm:$0xff]  ;;  %v322_v2 = vld [vmem:[%s1028_s10 + $0x2e8] sm:$0xff]  ;;  %s827_s30 = scalar_lea.hbm %s826_s26, 8  ;;  %s831_s8 = scalar_lea.hbm %s1211_s3, 16 }
  0x2d   : > { %v255_v8 = vld [vmem:[%s1028_s10 + $0xd0] sm:$0xff]  ;;  %436 = vmatpush.msra.mxu3 %v353_v7  ;;  %v253_v12 = vld [vmem:[%s1028_s10 + $0xc0] sm:$0xff]  ;;  %417 = vmatpush.msra.mxu2 %v319_v6  ;;  %v258_v4 = vld [vmem:[%s1028_s10 + $0xe8] sm:$0xff]  ;;  %p828_p3 = scmp.ne.s32.totalorder %s826_s26, %s827_s30  ;;  %p832_p11 = scmp.lt.s32.totalorder %s826_s26, %s1211_s3 }
  0x2e   : > { %v351_v10 = vld [vmem:[%s1028_s10 + $0x3d0] sm:$0xff]  ;;  %396 = vmatpush.msra.mxu1 %v289_v9  ;;  %377 = vmatpush.msra.mxu0 %v255_v8  ;;  %v349_v14 = vld [vmem:[%s1028_s10 + $0x3c0] sm:$0xff]  ;;  %v292_v5 = vld [vmem:[%s1028_s10 + $0x1f8] sm:$0xff]  ;;  %p833_p12 = scmp.lt.s32.totalorder %s831_s8, %s827_s30 }
  0x2f   : > { %v287_v13 = vld [vmem:[%s1028_s10 + $0x1d0] sm:$0xff]  ;;  %v285_v15 = vld [vmem:[%s1028_s10 + $0x1c0] sm:$0xff]  ;;  %437 = vmatpush.msra.mxu3 %v351_v10  ;;  %418 = vmatpush.msra.mxu2 %v317_v11  ;;  %v320_v6 = vld [vmem:[%s1028_s10 + $0x2d8] sm:$0xff]  ;;  %p829_p5 = pnand %p828_p3, %p975_p8 }
  0x30   : > { %397 = vmatpush.msra.mxu1 %v287_v13  ;;  %v315_v16 = vld [vmem:[%s1028_s10 + $0x2b0] sm:$0xff]  ;;  %378 = vmatpush.msra.mxu0 %v253_v12  ;;  %v313_v20 = vld [vmem:[%s1028_s10 + $0x2a0] sm:$0xff]  ;;  %v354_v7 = vld [vmem:[%s1028_s10 + $0x3e8] sm:$0xff]  ;;  %p834_p0 = por %p833_p12, %p832_p11 }
  0x31   : > { %v251_v17 = vld [vmem:[%s1028_s10 + $0xb0] sm:$0xff]  ;;  %438 = vmatpush.msra.mxu3 %v349_v14  ;;  %v249_v21 = vld [vmem:[%s1028_s10 + $0xa0] sm:$0xff]  ;;  %419 = vmatpush.msra.mxu2 %v315_v16  ;;  %v256_v8 = vld [vmem:[%s1028_s10 + $0xd8] sm:$0xff]  ;;  %p830_p7 = pneg %p829_p5 }
  0x32   : > { %v347_v18 = vld [vmem:[%s1028_s10 + $0x3b0] sm:$0xff]  ;;  %398 = vmatpush.msra.mxu1 %v285_v15  ;;  %379 = vmatpush.msra.mxu0 %v251_v17  ;;  %v345_v22 = vld [vmem:[%s1028_s10 + $0x3a0] sm:$0xff]  ;;  %v290_v9 = vld [vmem:[%s1028_s10 + $0x1e8] sm:$0xff] }
  0x33   : > { %v283_v19 = vld [vmem:[%s1028_s10 + $0x1b0] sm:$0xff]  ;;  %v281_v23 = vld [vmem:[%s1028_s10 + $0x1a0] sm:$0xff]  ;;  %439 = vmatpush.msra.mxu3 %v347_v18  ;;  %420 = vmatpush.msra.mxu2 %v313_v20  ;;  %v318_v10 = vld [vmem:[%s1028_s10 + $0x2c8] sm:$0xff]  ;;  %p835_p1 = pnand %p834_p0, %p830_p7 }
  0x34   : > { %399 = vmatpush.msra.mxu1 %v283_v19  ;;  %v311_v24 = vld [vmem:[%s1028_s10 + $0x290] sm:$0xff]  ;;  %380 = vmatpush.msra.mxu0 %v249_v21  ;;  %v309_v28 = vld [vmem:[%s1028_s10 + $0x280] sm:$0xff]  ;;  %v352_v11 = vld [vmem:[%s1028_s10 + $0x3d8] sm:$0xff] }
  0x35   : > { %v247_v25 = vld [vmem:[%s1028_s10 + $0x90] sm:$0xff]  ;;  %440 = vmatpush.msra.mxu3 %v345_v22  ;;  %v245_v29 = vld [vmem:[%s1028_s10 + $0x80] sm:$0xff]  ;;  %421 = vmatpush.msra.mxu2 %v311_v24  ;;  %v254_v12 = vld [vmem:[%s1028_s10 + $0xc8] sm:$0xff] }
  0x36   : > { %v343_v26 = vld [vmem:[%s1028_s10 + $0x390] sm:$0xff]  ;;  %400 = vmatpush.msra.mxu1 %v281_v23  ;;  %381 = vmatpush.msra.mxu0 %v247_v25  ;;  %v341_v30 = vld [vmem:[%s1028_s10 + $0x380] sm:$0xff]  ;;  %v288_v13 = vld [vmem:[%s1028_s10 + $0x1d8] sm:$0xff] }
  0x37   : > { %v279_v27 = vld [vmem:[%s1028_s10 + $0x190] sm:$0xff]  ;;  %v277_v31 = vld [vmem:[%s1028_s10 + $0x180] sm:$0xff]  ;;  %441 = vmatpush.msra.mxu3 %v343_v26  ;;  %422 = vmatpush.msra.mxu2 %v309_v28  ;;  %v227_v14 = vld [vmem:[#allocation5 + $0x8] sm:$0xff] }
  0x38   : > { %401 = vmatpush.msra.mxu1 %v279_v27  ;;  %v307_v32 = vld [vmem:[%s1028_s10 + $0x270] sm:$0xff]  ;;  %382 = vmatpush.msra.mxu0 %v245_v29  ;;  %v305_v36 = vld [vmem:[%s1028_s10 + $0x260] sm:$0xff]  ;;  %v316_v15 = vld [vmem:[%s1028_s10 + $0x2b8] sm:$0xff]  ;;  %366 = vst [vmem:[#allocation1 + $0x10] ss:$2 sm:$0xff] %v227_v14 }
  0x39   : > { %v243_v33 = vld [vmem:[%s1028_s10 + $0x70] sm:$0xff]  ;;  %442 = vmatpush.msra.mxu3 %v341_v30  ;;  %v241_v37 = vld [vmem:[%s1028_s10 + $0x60] sm:$0xff]  ;;  %423 = vmatpush.msra.mxu2 %v307_v32  ;;  %v350_v16 = vld [vmem:[%s1028_s10 + $0x3c8] sm:$0xff] }
  0x3a   : > { %v339_v34 = vld [vmem:[%s1028_s10 + $0x370] sm:$0xff]  ;;  %402 = vmatpush.msra.mxu1 %v277_v31  ;;  %383 = vmatpush.msra.mxu0 %v243_v33  ;;  %v337_v38 = vld [vmem:[%s1028_s10 + $0x360] sm:$0xff]  ;;  %v252_v18 = vld [vmem:[%s1028_s10 + $0xb8] sm:$0xff] }
  0x3b   : > { %v275_v35 = vld [vmem:[%s1028_s10 + $0x170] sm:$0xff]  ;;  %v273_v39 = vld [vmem:[%s1028_s10 + $0x160] sm:$0xff]  ;;  %443 = vmatpush.msra.mxu3 %v339_v34  ;;  %424 = vmatpush.msra.mxu2 %v305_v36  ;;  %v286_v19 = vld [vmem:[%s1028_s10 + $0x1c8] sm:$0xff] }
  0x3c   : > { %403 = vmatpush.msra.mxu1 %v275_v35  ;;  %v303_v40 = vld [vmem:[%s1028_s10 + $0x250] sm:$0xff]  ;;  %384 = vmatpush.msra.mxu0 %v241_v37  ;;  %v301_v44 = vld [vmem:[%s1028_s10 + $0x240] sm:$0xff]  ;;  %v314_v20 = vld [vmem:[%s1028_s10 + $0x2a8] sm:$0xff] }
  0x3d   : > { %v239_v41 = vld [vmem:[%s1028_s10 + $0x50] sm:$0xff]  ;;  %444 = vmatpush.msra.mxu3 %v337_v38  ;;  %v237_v45 = vld [vmem:[%s1028_s10 + $0x40] sm:$0xff]  ;;  %425 = vmatpush.msra.mxu2 %v303_v40  ;;  %v348_v21 = vld [vmem:[%s1028_s10 + $0x3b8] sm:$0xff] }
  0x3e   : > { %v335_v42 = vld [vmem:[%s1028_s10 + $0x350] sm:$0xff]  ;;  %404 = vmatpush.msra.mxu1 %v273_v39  ;;  %385 = vmatpush.msra.mxu0 %v239_v41  ;;  %v333_v46 = vld [vmem:[%s1028_s10 + $0x340] sm:$0xff]  ;;  %v250_v22 = vld [vmem:[%s1028_s10 + $0xa8] sm:$0xff] }
  0x3f   : > { %v271_v43 = vld [vmem:[%s1028_s10 + $0x150] sm:$0xff]  ;;  %v269_v47 = vld [vmem:[%s1028_s10 + $0x140] sm:$0xff]  ;;  %445 = vmatpush.msra.mxu3 %v335_v42  ;;  %426 = vmatpush.msra.mxu2 %v301_v44  ;;  %v284_v23 = vld [vmem:[%s1028_s10 + $0x1b8] sm:$0xff] }
  0x40   : > { %405 = vmatpush.msra.mxu1 %v271_v43  ;;  %v299_v48 = vld [vmem:[%s1028_s10 + $0x230] sm:$0xff]  ;;  %386 = vmatpush.msra.mxu0 %v237_v45  ;;  %v297_v52 = vld [vmem:[%s1028_s10 + $0x220] sm:$0xff]  ;;  %v312_v24 = vld [vmem:[%s1028_s10 + $0x298] sm:$0xff] }
  0x41   : > { %v235_v49 = vld [vmem:[%s1028_s10 + $0x30] sm:$0xff]  ;;  %446 = vmatpush.msra.mxu3 %v333_v46  ;;  %v233_v53 = vld [vmem:[%s1028_s10 + $0x20] sm:$0xff]  ;;  %427 = vmatpush.msra.mxu2 %v299_v48  ;;  %v346_v25 = vld [vmem:[%s1028_s10 + $0x3a8] sm:$0xff] }
  0x42   : > { %v331_v50 = vld [vmem:[%s1028_s10 + $0x330] sm:$0xff]  ;;  %406 = vmatpush.msra.mxu1 %v269_v47  ;;  %387 = vmatpush.msra.mxu0 %v235_v49  ;;  %v329_v54 = vld [vmem:[%s1028_s10 + $0x320] sm:$0xff]  ;;  %v248_v26 = vld [vmem:[%s1028_s10 + $0x98] sm:$0xff] }
  0x43   : > { %v267_v51 = vld [vmem:[%s1028_s10 + $0x130] sm:$0xff]  ;;  %v265_v55 = vld [vmem:[%s1028_s10 + $0x120] sm:$0xff]  ;;  %447 = vmatpush.msra.mxu3 %v331_v50  ;;  %428 = vmatpush.msra.mxu2 %v297_v52  ;;  %v282_v27 = vld [vmem:[%s1028_s10 + $0x1a8] sm:$0xff] }
  0x44   : > { %407 = vmatpush.msra.mxu1 %v267_v51  ;;  %v295_v56 = vld [vmem:[%s1028_s10 + $0x210] sm:$0xff]  ;;  %388 = vmatpush.msra.mxu0 %v233_v53  ;;  %v293_v60 = vld [vmem:[%s1028_s10 + $0x200] sm:$0xff]  ;;  %v310_v28 = vld [vmem:[%s1028_s10 + $0x288] sm:$0xff] }
  0x45   : > { %v231_v57 = vld [vmem:[%s1028_s10 + $0x10] sm:$0xff]  ;;  %448 = vmatpush.msra.mxu3 %v329_v54  ;;  %v229_v61 = vld [vmem:[%s1028_s10] sm:$0xff]  ;;  %429 = vmatpush.msra.mxu2 %v295_v56  ;;  %v344_v29 = vld [vmem:[%s1028_s10 + $0x398] sm:$0xff] }
  0x46   : > { %v327_v58 = vld [vmem:[%s1028_s10 + $0x310] sm:$0xff]  ;;  %408 = vmatpush.msra.mxu1 %v265_v55  ;;  %389 = vmatpush.msra.mxu0 %v231_v57  ;;  %v325_v63 = vld [vmem:[%s1028_s10 + $0x300] sm:$0xff]  ;;  %v246_v30 = vld [vmem:[%s1028_s10 + $0x88] sm:$0xff] }
  0x47   : > { %v263_v59 = vld [vmem:[%s1028_s10 + $0x110] sm:$0xff]  ;;  %449 = vmatpush.msra.mxu3 %v327_v58  ;;  %430 = vmatpush.msra.mxu2 %v293_v60  ;;  %v261_v3 = vld [vmem:[%s1028_s10 + $0x100] sm:$0xff]  ;;  %v280_v31 = vld [vmem:[%s1028_s10 + $0x198] sm:$0xff] }
  0x48   : > { %409 = vmatpush.msra.mxu1 %v263_v59  ;;  %390 = vmatpush.msra.mxu0 %v229_v61  ;;  %v226_v17 = vld [vmem:[#allocation5] sm:$0xff]  ;;  %v308_v32 = vld [vmem:[%s1028_s10 + $0x278] sm:$0xff]  ;;  %v342_v33 = vld [vmem:[%s1028_s10 + $0x388] sm:$0xff] }
  0x49   : > { %495 = vmatpush.msrb.mxu2 %v324_v62  ;;  %450 = vmatpush.msra.mxu3 %v325_v63  ;;  %364 = vst [vmem:[#allocation1] ss:$2 sm:$0xff] %v226_v17  ;;  %v244_v34 = vld [vmem:[%s1028_s10 + $0x78] sm:$0xff]  ;;  %v278_v35 = vld [vmem:[%s1028_s10 + $0x188] sm:$0xff] }
  0x4a   : > { %455 = vmatpush.msrb.mxu0 %v260_v0  ;;  %410 = vmatpush.msra.mxu1 %v261_v3  ;;  %v306_v36 = vld [vmem:[%s1028_s10 + $0x268] sm:$0xff]  ;;  %v340_v37 = vld [vmem:[%s1028_s10 + $0x378] sm:$0xff]  ;;  %v370_v52 = vld.sshfl [vmem:[#allocation1 + $0x18] sm:$0xff pattern:$0x75316420] }
  0x4b   : > { %515 = vmatpush.msrb.mxu3 %v356_v1  ;;  %496 = vmatpush.msrb.mxu2 %v322_v2  ;;  %v242_v38 = vld [vmem:[%s1028_s10 + $0x68] sm:$0xff]  ;;  %v276_v39 = vld [vmem:[%s1028_s10 + $0x178] sm:$0xff] }
  0x4c   : > { %456 = vmatpush.msrb.mxu0 %v258_v4  ;;  %475 = vmatpush.msrb.mxu1 %v292_v5  ;;  %v304_v40 = vld [vmem:[%s1028_s10 + $0x258] sm:$0xff]  ;;  %v338_v41 = vld [vmem:[%s1028_s10 + $0x368] sm:$0xff] }
  0x4d   : > { %497 = vmatpush.msrb.mxu2 %v320_v6  ;;  %516 = vmatpush.msrb.mxu3 %v354_v7  ;;  %v240_v42 = vld [vmem:[%s1028_s10 + $0x58] sm:$0xff]  ;;  %v274_v43 = vld [vmem:[%s1028_s10 + $0x168] sm:$0xff]  ;;  %v902_v7 = vmov 0  }
  0x4e   : > { %457 = vmatpush.msrb.mxu0 %v256_v8  ;;  %476 = vmatpush.msrb.mxu1 %v290_v9  ;;  %v302_v44 = vld [vmem:[%s1028_s10 + $0x248] sm:$0xff]  ;;  %v336_v45 = vld [vmem:[%s1028_s10 + $0x358] sm:$0xff] }
  0x4f   : > { %498 = vmatpush.msrb.mxu2 %v318_v10  ;;  %517 = vmatpush.msrb.mxu3 %v352_v11  ;;  %v369_v46 = vld.sshfl [vmem:[#allocation1 + $0x10] sm:$0xff pattern:$0x75316420]  ;;  %v272_v48 = vld [vmem:[%s1028_s10 + $0x158] sm:$0xff] }
  0x50   : > { %458 = vmatpush.msrb.mxu0 %v254_v12  ;;  %477 = vmatpush.msrb.mxu1 %v288_v13  ;;  %v238_v47 = vld [vmem:[%s1028_s10 + $0x48] sm:$0xff]  ;;  %v300_v49 = vld [vmem:[%s1028_s10 + $0x238] sm:$0xff]  ;;  %v368_v57 = vld.sshfl [vmem:[#allocation1 + $0x8] sm:$0xff pattern:$0x75316420] }
  0x51   : > { %499 = vmatpush.msrb.mxu2 %v316_v15  ;;  %518 = vmatpush.msrb.mxu3 %v350_v16  ;;  %v334_v50 = vld [vmem:[%s1028_s10 + $0x348] sm:$0xff]  ;;  %v367_v51 = vld.sshfl [vmem:[#allocation1] sm:$0xff pattern:$0x75316420] }
  0x52   : > { %459 = vmatpush.msrb.mxu0 %v252_v18  ;;  %478 = vmatpush.msrb.mxu1 %v286_v19  ;;  %v236_v53 = vld [vmem:[%s1028_s10 + $0x38] sm:$0xff]  ;;  %v270_v54 = vld [vmem:[%s1028_s10 + $0x148] sm:$0xff] }
  0x53   : > { %500 = vmatpush.msrb.mxu2 %v314_v20  ;;  %519 = vmatpush.msrb.mxu3 %v348_v21  ;;  %v298_v55 = vld [vmem:[%s1028_s10 + $0x228] sm:$0xff]  ;;  %v332_v56 = vld [vmem:[%s1028_s10 + $0x338] sm:$0xff] }
  0x54   : > { %460 = vmatpush.msrb.mxu0 %v250_v22  ;;  %479 = vmatpush.msrb.mxu1 %v284_v23  ;;  %v234_v58 = vld [vmem:[%s1028_s10 + $0x28] sm:$0xff]  ;;  %v268_v59 = vld [vmem:[%s1028_s10 + $0x138] sm:$0xff] }
  0x55   : > { %501 = vmatpush.msrb.mxu2 %v312_v24  ;;  %520 = vmatpush.msrb.mxu3 %v346_v25  ;;  %v296_v60 = vld [vmem:[%s1028_s10 + $0x218] sm:$0xff]  ;;  %v330_v61 = vld [vmem:[%s1028_s10 + $0x328] sm:$0xff] }
  0x56   : > { %461 = vmatpush.msrb.mxu0 %v248_v26  ;;  %480 = vmatpush.msrb.mxu1 %v282_v27  ;;  %v232_v62 = vld [vmem:[%s1028_s10 + $0x18] sm:$0xff]  ;;  %v266_v63 = vld [vmem:[%s1028_s10 + $0x128] sm:$0xff] }
  0x57   : > { %502 = vmatpush.msrb.mxu2 %v310_v28  ;;  %521 = vmatpush.msrb.mxu3 %v344_v29  ;;  %v294_v0 = vld [vmem:[%s1028_s10 + $0x208] sm:$0xff]  ;;  %v328_v1 = vld [vmem:[%s1028_s10 + $0x318] sm:$0xff] }
  0x58   : > { %462 = vmatpush.msrb.mxu0 %v246_v30  ;;  %481 = vmatpush.msrb.mxu1 %v280_v31  ;;  %v230_v2 = vld [vmem:[%s1028_s10 + $0x8] sm:$0xff]  ;;  %v264_v3 = vld [vmem:[%s1028_s10 + $0x118] sm:$0xff] }
  0x59   : > { %503 = vmatpush.msrb.mxu2 %v308_v32  ;;  %522 = vmatpush.msrb.mxu3 %v342_v33  ;;  %v326_v4 = vld [vmem:[%s1028_s10 + $0x308] sm:$0xff]  ;;  %v228_v6 = vld [vmem:[%s1210_s2] sm:$0xf] }
  0x5a   : > { %463 = vmatpush.msrb.mxu0 %v244_v34  ;;  %482 = vmatpush.msrb.mxu1 %v278_v35  ;;  %v262_v5 = vld [vmem:[%s1028_s10 + $0x108] sm:$0xff] }
  0x5b   : > { %504 = vmatpush.msrb.mxu2 %v306_v36  ;;  %523 = vmatpush.msrb.mxu3 %v340_v37 }
  0x5c   : > { %464 = vmatpush.msrb.mxu0 %v242_v38  ;;  %483 = vmatpush.msrb.mxu1 %v276_v39 }
  0x5d   : > { %505 = vmatpush.msrb.mxu2 %v304_v40  ;;  %524 = vmatpush.msrb.mxu3 %v338_v41 }
  0x5e   : > { %465 = vmatpush.msrb.mxu0 %v240_v42  ;;  %484 = vmatpush.msrb.mxu1 %v274_v43 }
  0x5f   : > { %506 = vmatpush.msrb.mxu2 %v302_v44  ;;  %525 = vmatpush.msrb.mxu3 %v336_v45 }
  0x60   : > { %431 = vmatmul.f32.vlgmr.msra.gmra.mxu2 %v369_v46  ;;  %466 = vmatpush.msrb.mxu0 %v238_v47 }
  0x61   : > { %485 = vmatpush.msrb.mxu1 %v272_v48  ;;  %507 = vmatpush.msrb.mxu2 %v300_v49 }
  0x62   : > { %526 = vmatpush.msrb.mxu3 %v334_v50  ;;  %391 = vmatmul.f32.vlgmr.msra.gmra.mxu0 %v367_v51 }
  0x63   : > { %451 = vmatmul.f32.vlgmr.msra.gmra.mxu3 %v370_v52  ;;  %467 = vmatpush.msrb.mxu0 %v236_v53 }
  0x64   : > { %486 = vmatpush.msrb.mxu1 %v270_v54  ;;  %508 = vmatpush.msrb.mxu2 %v298_v55 }
  0x65   : > { %527 = vmatpush.msrb.mxu3 %v332_v56  ;;  %411 = vmatmul.f32.vlgmr.msra.gmra.mxu1 %v368_v57 }
  0x66   : > { %468 = vmatpush.msrb.mxu0 %v234_v58  ;;  %487 = vmatpush.msrb.mxu1 %v268_v59 }
  0x67   : > { %509 = vmatpush.msrb.mxu2 %v296_v60  ;;  %528 = vmatpush.msrb.mxu3 %v330_v61 }
  0x68   : > { %469 = vmatpush.msrb.mxu0 %v232_v62  ;;  %488 = vmatpush.msrb.mxu1 %v266_v63 }
  0x69   : > { %510 = vmatpush.msrb.mxu2 %v294_v0  ;;  %529 = vmatpush.msrb.mxu3 %v328_v1 }
  0x6a   : > { %511 = vmatmul.f32.vlgmr.msrb.gmra.mxu2 %v369_v46  ;;  %470 = vmatpush.msrb.mxu0 %v230_v2 }
  0x6b   : > { %489 = vmatpush.msrb.mxu1 %v264_v3  ;;  %530 = vmatpush.msrb.mxu3 %v326_v4 }
  0x6c   : > { %471 = vmatmul.f32.vlgmr.msrb.gmra.mxu0 %v367_v51  ;;  %531 = vmatmul.f32.vlgmr.msrb.gmra.mxu3 %v370_v52 }
  0x6d   : > { %490 = vmatpush.msrb.mxu1 %v262_v5  ;;  %750 = vset.pattern.permute.xlu0 %v902_v7 }
  0x6e   : > { %491 = vmatmul.f32.vlgmr.msrb.gmra.mxu1 %v368_v57  ;;  %359 = vperm.xlu0 %750, %v228_v6  }
  0xdf   : > { %v392_v8 = vpop.f32.mrf.mxu0 }
  0xe0   : > { %v360_v10 = vpop.permute.xlu0 %359 }
  0xe1   : > { %v393_v12 = vadd.f32 %v392_v8, %v360_v10 }
  0xe2   : > { %v412_v9 = vpop.f32.mrf.mxu1 }
  0xe3   : > { %v432_v11 = vpop.f32.mrf.mxu2  ;;  %v413_v15 = vadd.f32 %v412_v9, %v393_v12 }
  0xe5   : > { %v433_v20 = vadd.f32 %v432_v11, %v413_v15 }
  0xe6   : > { %v452_v13 = vpop.f32.mrf.mxu3 }
  0xe7   : > { %v453_v24 = vadd.f32 %v452_v13, %v433_v20 }
  0xe9   : > { %v472_v14 = vpop.f32.mrf.mxu0 }
  0xea   : > { %v473_v16 = vadd.f32 %v472_v14, %v360_v10 }
  0xeb   : > { %v492_v17 = vpop.f32.mrf.mxu1 }
  0xec   : > { %v493_v18 = vadd.f32 %v492_v17, %v473_v16 }
  0xed   : > { %v512_v19 = vpop.f32.mrf.mxu2 }
  0xee   : > { %v513_v21 = vadd.f32 %v512_v19, %v493_v18 }
  0xef   : > { %v532_v22 = vpop.f32.mrf.mxu3 }
  0xf0   : > { %v533_v23 = vadd.f32 %v532_v22, %v513_v21 }
  0xf2   : > { %v537_v25 = vrot.slane %v533_v23, 4 }
  0xf4   : > { %v539_v26 = vsel %vm538_vm0, %v453_v24, %v537_v25 }
  0xf5   : > { %541 = vst [vmem:[%s223_s18] sm:$0xff] %v539_v26 }
  0xf6   : > { %838 = shalt.err (!%p835_p1)
}
  0xf7   : > { %680 = dma.vmem_to_hbm [thread:$0]  (%p975_p8), %s559_s19, 128, %s561_s22, %s543_s15  }
  0xf8 PF: > { %s572_s9 = sand.u32 1, %s877_s12   ;;  %p691_p2 = pnand %p659_p13, %p979_p9 }
  0xf9   : > { %s573_s1 = scalar_lea.sflag [#allocation4], %s572_s9 }
  0xfa   : > { %p692_p4 = pneg %p691_p2 }
  0xfc   : > { %872 = dma.done.wait (%p692_p4), %s573_s1, 128  }
  0xfd   : > { %874 = vsyncadd (%p692_p4), %s573_s1, 4294967168  ;;  %s20_s17 = sadd.s32 1, %s897_s17   ;;  %s1221_s12 = smov %s881_s13 }
  0xfe   : > { %p17_p6 = scmp.ge.s32.totalorder %s20_s17, 4   ;;  %s1222_s13 = smov %s885_s14 }
  0xff   : > { %s1223_s14 = smov %s1017_s27  ;;  %s1224_s15 = smov %s893_s16 }
 0x100   : > { %s1225_s16 = smov %s1227_s6  ;;  %19 = sbr.rel (!%p17_p6) target bundleno = 9 (0x9), region = 82 }
 0x105   :  { %579 = vsyncpa [#allocation3], 1 }
 0x106   :  { %581 = vsyncpa [#allocation3 + $0x1], 1 }
 0x107   :  { %582 = vsyncpa [#allocation6], 1 }
 0x108   :  { %583 = vsyncpa [#allocation4], 1 }
 0x109   :  { %585 = vsyncpa [#allocation4 + $0x1], 1 }

</bundles_post_ra>
